<compile_context>
chip_gen: v7x
topology: tpu7x:2x2x1
jax: 0.10.0
libtpu: 0.0.40
codegen_flags: <defaults>
</compile_context>

<pallas_src>
import jax
import jax.numpy as jnp
from jax.experimental import pallas as pl
from jax.experimental.pallas import tpu as pltpu


def linear_sub_kernel(x_ref, w_ref, o_ref):
    # Single MXU pass: (Bt, K_aug) @ (K_aug, OUT). Bias and the subtracted
    # constant live in the last row of w_ref (x's last column is all ones),
    # so there is no separate bias operand or VPU add.
    o_ref[...] = jnp.dot(
        x_ref[...], w_ref[...], preferred_element_type=jnp.float32
    ).astype(o_ref.dtype)


def prepare_weights(w, b, c):
    """One-time host-side fold: torch-layout (OUT, IN) weight, bias, and the
    subtracted constant -> single (IN+1, OUT) operand."""
    wt = w.T                            # (IN, OUT): no in-kernel relayout
    bc = (b - c).reshape(1, -1)         # (1, OUT)
    return jnp.concatenate([wt, bc], axis=0)   # (IN+1, OUT)


def linear_sub(x, w_aug, *, block_b=256):
    """y = x @ W^T + b - c, with W^T / b / c pre-folded into w_aug.

    x: (B, IN) f32,  w_aug: (IN+1, OUT) f32.
    """
    B, IN = x.shape
    K, OUT = w_aug.shape
    assert K == IN + 1

    # Augment x with a ones column so the fused (b - c) row of w_aug applies.
    # K pads to 128 MXU lanes anyway, so the extra column is free in-kernel.
    x_aug = jnp.concatenate([x, jnp.ones((B, 1), dtype=x.dtype)], axis=1)

    cost = pl.CostEstimate(
        flops=2 * B * K * OUT,
        transcendentals=0,
        bytes_accessed=(x_aug.size + w_aug.size + B * OUT) * 4,
    )
    out_shape = jax.ShapeDtypeStruct((B, OUT), jnp.float32)

    if B % block_b == 0 and B > block_b:
        # Batched path: grid over row blocks; "parallel" lets v7x shard the
        # blocks across its 2 TensorCores. Each tile is a few KiB of VMEM.
        return pl.pallas_call(
            linear_sub_kernel,
            out_shape=out_shape,
            grid=(B // block_b,),
            in_specs=[
                pl.BlockSpec((block_b, K), lambda i: (i, 0)),
                pl.BlockSpec((K, OUT), lambda i: (0, 0)),
            ],
            out_specs=pl.BlockSpec((block_b, OUT), lambda i: (i, 0)),
            compiler_params=pltpu.CompilerParams(
                dimension_semantics=("parallel",)
            ),
            cost_estimate=cost,
        )(x_aug, w_aug)

    # Tiny-B path: gridless single invocation, whole arrays resident in VMEM
    # (no pipelined-loop prologue/epilogue, no per-step bookkeeping).
    vmem = pl.BlockSpec(memory_space=pltpu.MemorySpace.VMEM)
    return pl.pallas_call(
        linear_sub_kernel,
        out_shape=out_shape,
        in_specs=[vmem, vmem],
        out_specs=vmem,
        cost_estimate=cost,
    )(x_aug, w_aug)


if __name__ == "__main__":
    key = jax.random.PRNGKey(0)
    kx, kw, kb, kx2 = jax.random.split(key, 4)

    IN, OUT = 13, 8

    # Matches the PyTorch module: x1 = torch.randn(1, 13)
    x = jax.random.normal(kx, (1, IN), dtype=jnp.float32)

    # Deterministic "Linear(13, 8)" parameters (synthetic init, torch layout).
    w = jax.random.normal(kw, (OUT, IN), dtype=jnp.float32) * 0.1   # (out_features, in_features)
    b = jax.random.normal(kb, (OUT,), dtype=jnp.float32) * 0.1
    c = jnp.array([1.0, 2.0, 3.0, 4.0, 5.0, 6.0, 7.0, 8.0], dtype=jnp.float32)

    # One-time host-side fold of W^T and (b - c).
    w_aug = prepare_weights(w, b, c)

    # Spec-shape run (B = 1, gridless path).
    out = linear_sub(x, w_aug)
    jax.block_until_ready(out)
    ref = x @ w.T + b - c
    assert out.shape == (1, OUT)
    assert jnp.allclose(out, ref, atol=1e-5, rtol=1e-5)

    # Batched run (B = 512) exercising the gridded, megacore-parallel path.
    xb = jax.random.normal(kx2, (512, IN), dtype=jnp.float32)
    out_b = linear_sub(xb, w_aug)
    jax.block_until_ready(out_b)
    ref_b = xb @ w.T + b - c
    assert out_b.shape == (512, OUT)
    assert jnp.allclose(out_b, ref_b, atol=1e-5, rtol=1e-5)

    print("KERNEL_OK")
</pallas_src>

<mosaic_0001>
module attributes {stable_mosaic.version = 11 : i64} {
  func.func @linear_sub_kernel(%arg0: memref<1x14xf32, #tpu.memory_space<vmem>>, %arg1: memref<14x8xf32, #tpu.memory_space<vmem>>, %arg2: memref<1x8xf32, #tpu.memory_space<vmem>>) attributes {dimension_semantics = [], scalar_prefetch = 0 : i64, scratch_operands = 0 : i64, tpu.core_type = #tpu.core_type<tc>} {
    %c0 = arith.constant 0 : index
    %c0_0 = arith.constant 0 : index
    %0 = vector.load %arg0[%c0, %c0_0] : memref<1x14xf32, #tpu.memory_space<vmem>>, vector<1x14xf32>
    %c0_1 = arith.constant 0 : index
    %c0_2 = arith.constant 0 : index
    %1 = vector.load %arg1[%c0_1, %c0_2] : memref<14x8xf32, #tpu.memory_space<vmem>>, vector<14x8xf32>
    %cst = arith.constant dense<0.000000e+00> : vector<1x8xf32>
    %2 = tpu.matmul %0, %1, %cst {dimension_numbers = #tpu.dot_dimension_numbers<[1], [0], [0], [1], [0, 0, 1, 1], [], []>} : vector<1x14xf32>, vector<14x8xf32>, vector<1x8xf32> -> vector<1x8xf32>
    %c0_3 = arith.constant 0 : index
    %c0_4 = arith.constant 0 : index
    %3 = vector.load %arg2[%c0_3, %c0_4] : memref<1x8xf32, #tpu.memory_space<vmem>>, vector<1x8xf32>
    tpu.vector_store %arg2[%c0_3, %c0_4], %2 {strides = array<i32>} : memref<1x8xf32, #tpu.memory_space<vmem>>, vector<1x8xf32>,
    return
  }
}

</mosaic_0001>

<bundles_post_ra>
// kernel: tpu_custom_call.1
= control target key start
LH: loop header
LB: loop body
LE: loop exit
PB: predicated region body
PF: predicated region fallthrough
CT: control target
= control target key end

     0   :  { %vm19_vm0 = vcmask 1045504   ;;  %v154_v2 = vmov 0.0|0.0   ;;  %vm155_vm1 = vmmov 1   ;;  %vm156_vm3 = vmmov 0   ;;  %s195_s0 = inlined_call_operand.vmem [shape: f32[1,14], index: 0, kind: input, shape index: {}]   ;;  %s196_s1 = inlined_call_operand.vmem [shape: f32[14,8], index: 1, kind: input, shape index: {}]   ;;  %s197_s2 = inlined_call_operand.hbm [shape: f32[1,8], index: 2, kind: output, shape index: {}]  }
   0x1   :  { %v13_v0 = vld [vmem:[%s196_s1] sm:$0xff]  ;;  %v14_v1 = vld [vmem:[%s196_s1 + $0x8] sm:$0x3f]  ;;  %121 = vmatprep.subr.bf16.mxu0 %v154_v2  ;;  %vm123_vm2 = vmpackc.low %vm19_vm0, %vm155_vm1  ;;  %v157_v4 = vmov 0.0  }
   0x2   :  { %v122_v3 = vpack.c.bf16 %v14_v1, %v13_v0  ;;  %118 = vmatprep.mubr.msk.f32.mxu0 %vm156_vm3, %v157_v4 }
   0x3   :  { %7 = vsyncpa [#allocation3], 0  ;;  %v12_v5 = vld [vmem:[%s195_s0] sm:$0x1]  ;;  %vm15_vm4 = vcmask 113664   ;;  %s158_s15 = smov [#allocation2]  }
   0x4   :  { %124 = vmatpush3.bf16.msk.msra.mxu0 %vm123_vm2, %v122_v3  ;;  %s101_s16 = sshll.u32 %s158_s15, 4  ;;  %vm93_vm5 = vcmask 57344   ;;  %s102_s16 = int_to_ptr.vmem [resolvable:$true] %s101_s16 }
   0x5   :  { %s130_s1 = scalar_lea.vmem %s102_s16, 16  ;;  %s134_s17 = scalar_lea.vmem %s102_s16, 32 }
   0x6   :  { %p131_p0 = scmp.ne.s32.totalorder %s102_s16, %s130_s1  ;;  %p135_p1 = scmp.lt.s32.totalorder %s102_s16, %s102_s16 }
   0x7   :  { %119 = vmatmul.mubr.msk.f32.vlgmr.msra.gmra.mrb[0].mxu0 %vm15_vm4, %v12_v5  ;;  %p136_p2 = scmp.lt.s32.totalorder %s134_s17, %s130_s1 }
   0x9   :  { %p137_p3 = por %p136_p2, %p135_p1 }
   0xb   :  { %p138_p4 = pnand %p137_p3, %p131_p0 }
  0xda   :  { %v89_v6 = vpop.f32.mrb[0].mxu0 }
  0xdb   :  { %94 = vst.msk [vmem:[#allocation2] sm:$0x1] %vm93_vm5, %v89_v6  ;;  %v120_v7 = vpop.f32.mrb[1].mxu0 }
  0xdc   :  { %141 = shalt.err (!%p138_p4)
}
  0xdd   :  { %s142_s0 = scalar_lea.hbm %s197_s2, 16 }
  0xde   :  { %p143_p5 = scmp.ne.s32.totalorder %s197_s2, %s142_s0  ;;  %p146_p6 = scmp.lt.u32.totalorder %s142_s0, %s197_s2 }
  0xe0   :  { %p148_p7 = pnand %p146_p6, %p143_p5 }
  0xe2   :  { %151 = shalt.err (!%p148_p7)
}
  0xe3   :  { %104 = dma.vmem_to_hbm [thread:$0]  %s102_s16, 16, %s197_s2, [#allocation3]  }
  0xe4   :  { %152 = dma.done.wait [#allocation3], 16  }
  0xe5   :  { %153 = vsyncadd [#allocation3], 4294967280 }
  0xe6   :  { %108 = vsyncpa [#allocation3], 1 }

</bundles_post_ra>
